<compile_context>
chip_gen: v6e
topology: v6e:2x2x1
jax: 0.10.0
libtpu: 0.0.40
codegen_flags: <defaults>
</compile_context>

<pallas_src>
import functools

import jax
import jax.numpy as jnp
import numpy as np
from jax.experimental import pallas as pl
from jax.experimental.pallas import tpu as pltpu


def _round_up(x, m):
    return ((x + m - 1) // m) * m


def _pad_rows(x, n_pad):
    if x.shape[0] == n_pad:
        return x
    return jnp.pad(x, ((0, n_pad - x.shape[0]), (0, 0)))


def _eup_has_bf16():
    """bf16 transcendental path exists on v6e / v7x, not on v5 and older."""
    try:
        kind = jax.devices()[0].device_kind.lower()
    except Exception:
        return True
    return not any(t in kind for t in ("v2", "v3", "v4", "v5"))


# ---------------------------------------------------------------------------
# Tiling choices (shared by preprocessing and forward).
# ---------------------------------------------------------------------------
def choose_tiles(n_dst, n_src, block_dst=128, block_src=128):
    # dst tile: multiple of 32 (int8 mask sublane tiling), >=2 tiles when
    # possible so the "parallel" axis covers both v7x TensorCores.
    td = min(block_dst, _round_up(n_dst, 32))
    nd_pad = _round_up(n_dst, td)
    if nd_pad // td < 2 and td >= 64:
        td = _round_up(td // 2, 32)
        nd_pad = _round_up(n_dst, td)
    # src tile: lane-dense multiple of 128.
    ts = min(block_src, _round_up(n_src, 128))
    ns_pad = _round_up(n_src, ts)
    return td, nd_pad, ts, ns_pad


# ---------------------------------------------------------------------------
# Host-side, once-per-graph preprocessing (NOT in the per-call forward):
# dense int8 block mask + per-dst-tile list of non-empty src blocks.
# ---------------------------------------------------------------------------
def precompute_graph_blocks(edge_list, n_dst, n_src, *, block_dst=128, block_src=128):
    td, nd_pad, ts, ns_pad = choose_tiles(n_dst, n_src, block_dst, block_src)
    e = np.asarray(edge_list)
    di = e[0].astype(np.int64)
    si = e[1].astype(np.int64)
    n_i, n_j = nd_pad // td, ns_pad // ts

    mask = np.zeros((nd_pad, ns_pad), np.int8)
    mask[di, si] = 1

    counts = np.zeros((n_i, n_j), np.int64)
    np.add.at(counts, (di // td, si // ts), 1)

    nnz = (counts > 0).sum(axis=1).astype(np.int32)           # [n_i]
    max_nnz = int(max(1, nnz.max())) if n_i > 0 else 1
    blk_tbl = np.zeros((n_i, max_nnz), np.int32)
    for i in range(n_i):
        js = np.nonzero(counts[i] > 0)[0].astype(np.int32)
        blk_tbl[i, : len(js)] = js
        if len(js):
            # pad with the last valid block so skipped steps re-use the
            # already-resident src/mask blocks (no new DMA).
            blk_tbl[i, len(js):] = js[-1]

    return dict(
        mask=jnp.asarray(mask),
        nnz=jnp.asarray(nnz),
        blk_tbl=jnp.asarray(blk_tbl.reshape(-1)),
        max_nnz=max_nnz,
        td=td, ts=ts, nd_pad=nd_pad, ns_pad=ns_pad,
    )


# ---------------------------------------------------------------------------
# Kernel 1: row-tiled linear  y = cast_bf16(x) @ wT_aug + b_aug.
# The f32 -> bf16 cast happens in-kernel (no extra HBM pass in the wrapper).
# ---------------------------------------------------------------------------
def _linear_kernel(x_ref, wT_ref, b_ref, o_ref):
    x = x_ref[...].astype(jnp.bfloat16)
    acc = jnp.dot(x, wT_ref[...], preferred_element_type=jnp.float32)
    o_ref[...] = (acc + b_ref[...]).astype(o_ref.dtype)


def linear_pallas(x, wT, b_row, block_rows):
    """x: [N, F] f32, wT: [F, Hp] bf16, b_row: [1, Hp] f32 -> [N, Hp] bf16."""
    n, f = x.shape
    hp = wT.shape[1]
    return pl.pallas_call(
        _linear_kernel,
        out_shape=jax.ShapeDtypeStruct((n, hp), jnp.bfloat16),
        grid_spec=pltpu.PrefetchScalarGridSpec(
            num_scalar_prefetch=0,
            grid=(n // block_rows,),
            in_specs=[
                pl.BlockSpec((block_rows, f), lambda i: (i, 0)),
                pl.BlockSpec((f, hp), lambda i: (0, 0)),   # weight stays resident
                pl.BlockSpec((1, hp), lambda i: (0, 0)),   # bias row stays resident
            ],
            out_specs=pl.BlockSpec((block_rows, hp), lambda i: (i, 0)),
        ),
        compiler_params=pltpu.CompilerParams(dimension_semantics=("parallel",)),
    )(x, wT, b_row)


# ---------------------------------------------------------------------------
# Kernel 2: block-CSR edge attention + online masked softmax + aggregation.
#
#   e_ij    = tanh( s_dst[i] + s_src[j] )      (att bias already folded in)
#   attn    = sparse row-softmax over existing edges
#   h_prime = attn @ src_h + bias
#
# Inner grid iterates ONLY the non-empty src blocks of each dst tile.
# ---------------------------------------------------------------------------
def _gat_attn_kernel(nnz_ref, blk_ref, sdst_ref, ssrc_ref, src_ref,
                     mask_ref, bias_ref, o_ref, m_sc, l_sc, acc_sc,
                     *, bf16_eup):
    i = pl.program_id(0)
    s = pl.program_id(1)

    @pl.when(s == 0)
    def _init():
        m_sc[...] = jnp.full_like(m_sc, -jnp.inf)
        l_sc[...] = jnp.zeros_like(l_sc)
        acc_sc[...] = jnp.zeros_like(acc_sc)

    # Padded steps (s >= nnz of this dst tile) do no compute and, because the
    # block table repeats the last valid block, no new DMA either.
    @pl.when(s < nnz_ref[i])
    def _compute():
        neg = jnp.float32(-1e30)
        z = sdst_ref[...] + ssrc_ref[...]                       # [Td,1]+[1,Ts]
        if bf16_eup:
            logits = jnp.tanh(z.astype(jnp.bfloat16)).astype(jnp.float32)
        else:
            logits = jnp.tanh(z)
        edge = mask_ref[...] > 0                                # int8 -> bool
        masked = jnp.where(edge, logits, neg)                   # f32 for max
        m_prev = m_sc[...]
        m_new = jnp.maximum(m_prev, jnp.max(masked, axis=-1, keepdims=True))
        alpha = jnp.exp(m_prev - m_new)                         # [Td,1] f32
        d = masked - m_new
        if bf16_eup:
            p = jnp.where(edge, jnp.exp(d.astype(jnp.bfloat16)), 0.0)
        else:
            p = jnp.where(edge, jnp.exp(d), 0.0)                # explicit zeroing
        l_sc[...] = alpha * l_sc[...] + jnp.sum(
            p.astype(jnp.float32), axis=-1, keepdims=True)
        src = src_ref[...]                                      # [Ts, Hp] bf16
        acc_sc[...] = alpha * acc_sc[...] + jnp.dot(
            p.astype(src.dtype), src, preferred_element_type=jnp.float32)
        m_sc[...] = m_new

    @pl.when(s == pl.num_programs(1) - 1)
    def _finalize():
        l = l_sc[...]
        has_edge = l > 0.0          # rows with no edges -> all-zero attention
        inv_l = pl.reciprocal(jnp.where(has_edge, l, 1.0), approx=True)
        out = jnp.where(has_edge, acc_sc[...] * inv_l, 0.0) + bias_ref[...]
        o_ref[...] = out.astype(o_ref.dtype)


def gat_attention_pallas(s_dst, s_srcT, src_aug, mask, bias_aug,
                         nnz, blk_tbl, td, ts, max_nnz, bf16_eup):
    nd_pad = s_dst.shape[0]
    ns_pad, hp = src_aug.shape
    n_i = nd_pad // td

    kernel = functools.partial(_gat_attn_kernel, bf16_eup=bool(bf16_eup))

    grid_spec = pltpu.PrefetchScalarGridSpec(
        num_scalar_prefetch=2,          # per-dst-tile nnz + src-block table
        grid=(n_i, max_nnz),
        in_specs=[
            pl.BlockSpec((td, 1), lambda i, s, nnz, blk: (i, 0)),
            pl.BlockSpec((1, ts), lambda i, s, nnz, blk: (0, blk[i * max_nnz + s])),
            pl.BlockSpec((ts, hp), lambda i, s, nnz, blk: (blk[i * max_nnz + s], 0)),
            pl.BlockSpec((td, ts), lambda i, s, nnz, blk: (i, blk[i * max_nnz + s])),
            pl.BlockSpec((1, hp), lambda i, s, nnz, blk: (0, 0)),
        ],
        out_specs=pl.BlockSpec((td, hp), lambda i, s, nnz, blk: (i, 0)),
        scratch_shapes=[
            pltpu.VMEM((td, 1), jnp.float32),    # running max m
            pltpu.VMEM((td, 1), jnp.float32),    # running denom l
            pltpu.VMEM((td, hp), jnp.float32),   # running accumulator
        ],
    )
    return pl.pallas_call(
        kernel,
        out_shape=jax.ShapeDtypeStruct((nd_pad, hp), jnp.bfloat16),
        grid_spec=grid_spec,
        compiler_params=pltpu.CompilerParams(
            dimension_semantics=("parallel", "arbitrary")),
    )(nnz, blk_tbl, s_dst, s_srcT, src_aug, mask, bias_aug)


# ---------------------------------------------------------------------------
# GATConv forward (glue in plain JAX, hot paths in Pallas)
# ---------------------------------------------------------------------------
def gat_conv_forward(params, dst_h, source_h, graph, n_dst, n_src,
                     *, block_rows=512, use_bf16_eup=None):
    if use_bf16_eup is None:
        use_bf16_eup = _eup_has_bf16()

    f_in = dst_h.shape[1]
    hid = params["feat_w"].shape[0]
    hp = _round_up(hid + 1, 128)        # lane-dense hidden (+1 src-score column)

    td, ts = graph["td"], graph["ts"]
    nd_pad, ns_pad = graph["nd_pad"], graph["ns_pad"]

    # ---- fold the attention projections / bias into the linear weights -----
    w = params["feat_w"].astype(jnp.float32)          # [H, F_in]
    b = params["feat_b"].astype(jnp.float32)          # [H]
    w_dst = params["att_w"][0, :hid].astype(jnp.float32)
    w_src = params["att_w"][0, hid:].astype(jnp.float32)
    att_b = params["att_b"][0].astype(jnp.float32)

    wT_aug = jnp.zeros((f_in, hp), jnp.float32)
    wT_aug = wT_aug.at[:, :hid].set(w.T)
    wT_aug = wT_aug.at[:, hid].set(w.T @ w_src)
    b_aug = jnp.zeros((hp,), jnp.float32)
    b_aug = b_aug.at[:hid].set(b)
    b_aug = b_aug.at[hid].set(b @ w_src)

    # ---- src projection + src score in ONE Pallas pass (bf16 MXU, in-kernel
    #      f32->bf16 cast, no concat / wrapper cast pass).  Dropout = identity
    #      (eval mode).
    src_in = _pad_rows(source_h.astype(jnp.float32), ns_pad)
    tn = min(block_rows, ns_pad)
    tn = max(ts, (tn // ts) * ts)
    while ns_pad % tn:
        tn -= ts
    src_aug = linear_pallas(src_in, wT_aug.astype(jnp.bfloat16),
                            b_aug.reshape(1, hp), tn)      # [ns_pad, Hp] bf16
    s_srcT = src_aug[:, hid].astype(jnp.float32).reshape(1, ns_pad)

    # ---- dst score: the module only ever uses the projected dst features
    #      through the attention score, so the whole dst projection collapses
    #      to a skinny folded matvec (one f32 read of dst_h, [N_dst,1] write).
    v_dst = w.T @ w_dst                                     # [F_in]
    c_dst = jnp.dot(b, w_dst) + att_b
    s_dst = _pad_rows(dst_h.astype(jnp.float32) @ v_dst[:, None] + c_dst, nd_pad)

    bias_aug = jnp.zeros((1, hp), jnp.float32).at[0, :hid].set(
        params["bias"].astype(jnp.float32))

    out = gat_attention_pallas(s_dst, s_srcT, src_aug, graph["mask"], bias_aug,
                               graph["nnz"], graph["blk_tbl"], td, ts,
                               graph["max_nnz"], use_bf16_eup)
    # bf16 attention output (writeback is half of f32; data is already bf16-
    # precision-limited by the feature / p path).
    return out[:n_dst, :hid].astype(jnp.float32)


# ---------------------------------------------------------------------------
# Pure-JAX f32 reference (faithful to the torch module) for correctness.
# ---------------------------------------------------------------------------
def gat_conv_reference(params, dst_h, source_h, edge_list, n_dst, n_src):
    dst_hp = dst_h @ params["feat_w"].T + params["feat_b"]
    src_hp = source_h @ params["feat_w"].T + params["feat_b"]
    hid = params["feat_w"].shape[0]
    w_dst = params["att_w"][0, :hid]
    w_src = params["att_w"][0, hid:]
    di, si = edge_list[0], edge_list[1]
    mask = jnp.zeros((n_dst, n_src), jnp.float32).at[di, si].set(1.0)
    logits = jnp.tanh(dst_hp @ w_dst[:, None] + (src_hp @ w_src[:, None]).T
                      + params["att_b"][0])
    masked = jnp.where(mask > 0, logits, -1e30)
    m = jnp.max(masked, axis=-1, keepdims=True)
    p = jnp.where(mask > 0, jnp.exp(masked - m), 0.0)
    denom = jnp.sum(p, axis=-1, keepdims=True)
    attn = jnp.where(denom > 0, p / denom, 0.0)
    return attn @ src_hp + params["bias"]


if __name__ == "__main__":
    in_features = 64
    hid_features = 32
    n_dst, n_src = 256, 384
    n_edges = 2048

    key = jax.random.PRNGKey(0)
    k_dst, k_src, k_fw, k_fb, k_aw, k_ab, k_e = jax.random.split(key, 7)

    dst_h = jax.random.normal(k_dst, (n_dst, in_features), jnp.float32)
    source_h = jax.random.normal(k_src, (n_src, in_features), jnp.float32)

    # Deterministic parameter init (synthetic; module __init__ gives shapes).
    params = {
        "feat_w": jax.random.normal(k_fw, (hid_features, in_features), jnp.float32) * 0.1,
        "feat_b": jax.random.normal(k_fb, (hid_features,), jnp.float32) * 0.1,
        "att_w": jax.random.normal(k_aw, (1, 2 * hid_features), jnp.float32) * 0.1,
        "att_b": jax.random.normal(k_ab, (1,), jnp.float32) * 0.1,
        "bias": jnp.zeros((hid_features,), jnp.float32),  # reset_parameters -> 0
    }

    # Unique edges restricted to the first half of src nodes so some
    # (dst_tile, src_tile) blocks are empty -> exercises the block-CSR inner
    # grid (max_nnz < n_src_tiles) and the online-softmax multi-tile path.
    half_src = n_src // 2
    flat = jax.random.choice(k_e, n_dst * half_src, shape=(n_edges,),
                             replace=False)
    edge_list = jnp.stack([flat // half_src, flat % half_src]).astype(jnp.int32)

    # Once-per-graph host-side preprocessing (block mask / nnz / block table).
    graph = precompute_graph_blocks(edge_list, n_dst, n_src,
                                    block_dst=128, block_src=128)

    out = gat_conv_forward(params, dst_h, source_h, graph, n_dst, n_src,
                           block_rows=512)
    out = jax.block_until_ready(out)

    ref = gat_conv_reference(params, dst_h, source_h, edge_list, n_dst, n_src)
    # bf16 feature / probability / output path vs f32 reference -> relaxed tol.
    np.testing.assert_allclose(np.asarray(out), np.asarray(ref),
                               rtol=5e-2, atol=5e-2)

    print("KERNEL_OK")
</pallas_src>

<mosaic_0001>
module attributes {stable_mosaic.version = 11 : i64} {
  func.func @_linear_kernel(%arg0: i32, %arg1: memref<384x64xf32, #tpu.memory_space<vmem>>, %arg2: memref<64x128xbf16, #tpu.memory_space<vmem>>, %arg3: memref<1x128xf32, #tpu.memory_space<vmem>>, %arg4: memref<384x128xbf16, #tpu.memory_space<vmem>>) attributes {dimension_semantics = [#tpu.dimension_semantics<parallel>], iteration_bounds = array<i64: 1>, scalar_prefetch = 0 : i64, scratch_operands = 0 : i64, tpu.core_type = #tpu.core_type<tc>, window_params = [{transform_indices = @transform_0, window_bounds = array<i64: 384, 64>}, {pipeline_mode = #tpu.pipeline_mode<synchronous>, transform_indices = @transform_1, window_bounds = array<i64: 64, 128>}, {pipeline_mode = #tpu.pipeline_mode<synchronous>, transform_indices = @transform_2, window_bounds = array<i64: 1, 128>}, {transform_indices = @transform_3, window_bounds = array<i64: 384, 128>}]} {
    %c0 = arith.constant 0 : index
    %c0_0 = arith.constant 0 : index
    %0 = vector.load %arg1[%c0, %c0_0] : memref<384x64xf32, #tpu.memory_space<vmem>>, vector<384x64xf32>
    %1 = arith.truncf %0 : vector<384x64xf32> to vector<384x64xbf16>
    %c0_1 = arith.constant 0 : index
    %c0_2 = arith.constant 0 : index
    %2 = vector.load %arg2[%c0_1, %c0_2] : memref<64x128xbf16, #tpu.memory_space<vmem>>, vector<64x128xbf16>
    %cst = arith.constant dense<0.000000e+00> : vector<384x128xf32>
    %3 = tpu.matmul %1, %2, %cst {dimension_numbers = #tpu.dot_dimension_numbers<[1], [0], [0], [1], [0, 0, 1, 1], [], []>} : vector<384x64xbf16>, vector<64x128xbf16>, vector<384x128xf32> -> vector<384x128xf32>
    %c0_3 = arith.constant 0 : index
    %c0_4 = arith.constant 0 : index
    %4 = vector.load %arg3[%c0_3, %c0_4] : memref<1x128xf32, #tpu.memory_space<vmem>>, vector<1x128xf32>
    %5 = vector.broadcast %4 : vector<1x128xf32> to vector<384x128xf32>
    %6 = arith.addf %3, %5 : vector<384x128xf32>
    %7 = arith.truncf %6 : vector<384x128xf32> to vector<384x128xbf16>
    %c0_5 = arith.constant 0 : index
    %c0_6 = arith.constant 0 : index
    %8 = vector.load %arg4[%c0_5, %c0_6] : memref<384x128xbf16, #tpu.memory_space<vmem>>, vector<384x128xbf16>
    tpu.vector_store %arg4[%c0_5, %c0_6], %7 {strides = array<i32>} : memref<384x128xbf16, #tpu.memory_space<vmem>>, vector<384x128xbf16>,
    return
  }
  func.func @transform_0(%arg0: i32) -> (i32, i32) {
    %c0_i32 = arith.constant 0 : i32
    %c0_i32_0 = arith.constant 0 : i32
    return %arg0, %c0_i32 : i32, i32
  }
  func.func @transform_1(%arg0: i32) -> (i32, i32) {
    %c0_i32 = arith.constant 0 : i32
    %c0_i32_0 = arith.constant 0 : i32
    %c0_i32_1 = arith.constant 0 : i32
    return %c0_i32, %c0_i32_0 : i32, i32
  }
  func.func @transform_2(%arg0: i32) -> (i32, i32) {
    %c0_i32 = arith.constant 0 : i32
    %c0_i32_0 = arith.constant 0 : i32
    %c0_i32_1 = arith.constant 0 : i32
    return %c0_i32, %c0_i32_0 : i32, i32
  }
  func.func @transform_3(%arg0: i32) -> (i32, i32) {
    %c0_i32 = arith.constant 0 : i32
    %c0_i32_0 = arith.constant 0 : i32
    return %arg0, %c0_i32 : i32, i32
  }
}

</mosaic_0001>

<bundles_post_ra>
// kernel: tpu_custom_call.1
= control target key start
LH: loop header
LB: loop body
LE: loop exit
PB: predicated region body
PF: predicated region fallthrough
CT: control target
= control target key end

     0   :  { %vm127_vm0 = vcmask 523264   ;;  %s1329_s0 = inlined_call_operand.vmem [shape: f32[384,64], index: 0, kind: input, shape index: {}]   ;;  %s1330_s1 = inlined_call_operand.vmem [shape: bf16[64,128], index: 1, kind: input, shape index: {}]   ;;  %s1331_s2 = inlined_call_operand.vmem [shape: f32[1,128], index: 2, kind: input, shape index: {}]   ;;  %s1332_s3 = inlined_call_operand.hbm [shape: bf16[384,128], index: 3, kind: output, shape index: {}]  }
   0x1   :  { %v1044_v0 = vld [vmem:[%s1330_s1 + $0x18] sm:$0xff]   ;;  %v1045_v1 = vld [vmem:[%s1330_s1 + $0x10] sm:$0xff]   ;;  %v1046_v2 = vld [vmem:[%s1330_s1 + $0x8] sm:$0xff]  }
   0x2   :  { %977 = vmatprep.subr.bf16.mxu0 %v1044_v0  ;;  %1033 = vmatprep.subr.bf16.mxu1 %v1044_v0  ;;  %v16_v3 = vld [vmem:[%s1329_s0] sm:$0xff]  ;;  %v17_v4 = vld [vmem:[%s1329_s0 + $0x8] sm:$0xff]  ;;  %v18_v10 = vld [vmem:[%s1329_s0 + $0x10] sm:$0xff] }
   0x3   :  { %978 = vmatpush3.bf16.msra.mxu0 %v1044_v0  ;;  %1037 = vmatpush3.bf16.msra.mxu1 %v1044_v0  ;;  %v40_v5 = vld [vmem:[%s1329_s0 + $0xc0] sm:$0xff]  ;;  %v64_v6 = vpack.c.bf16 %v17_v4, %v16_v3  ;;  %v41_v7 = vld [vmem:[%s1329_s0 + $0xc8] sm:$0xff]  ;;  %v19_v11 = vld [vmem:[%s1329_s0 + $0x18] sm:$0xff] }
   0x4   :  { %979 = vmatprep.subr.bf16.mxu0 %v1045_v1  ;;  %1034 = vmatprep.subr.bf16.mxu1 %v1045_v1  ;;  %v76_v8 = vpack.c.bf16 %v41_v7, %v40_v5  ;;  %v1047_v9 = vld [vmem:[%s1330_s1] sm:$0xff]   ;;  %v42_v12 = vld [vmem:[%s1329_s0 + $0xd0] sm:$0xff]  ;;  %v43_v13 = vld [vmem:[%s1329_s0 + $0xd8] sm:$0xff]  ;;  %v65_v18 = vpack.c.bf16 %v19_v11, %v18_v10 }
   0x5   :  { %985 = vmatprep.mubr.msk.bf16.mxu0 %vm127_vm0, %v64_v6  ;;  %v20_v14 = vld [vmem:[%s1329_s0 + $0x20] sm:$0xff]  ;;  %v21_v15 = vld [vmem:[%s1329_s0 + $0x28] sm:$0xff]  ;;  %v77_v19 = vpack.c.bf16 %v43_v13, %v42_v12  ;;  %v22_v22 = vld [vmem:[%s1329_s0 + $0x30] sm:$0xff] }
   0x6   :  { %1009 = vmatprep.mubr.msk.bf16.mxu1 %vm127_vm0, %v76_v8  ;;  %v44_v16 = vld [vmem:[%s1329_s0 + $0xe0] sm:$0xff]  ;;  %v45_v17 = vld [vmem:[%s1329_s0 + $0xe8] sm:$0xff]  ;;  %v66_v20 = vpack.c.bf16 %v21_v15, %v20_v14  ;;  %v23_v23 = vld [vmem:[%s1329_s0 + $0x38] sm:$0xff] }
   0x7   :  { %980 = vmatpush3.bf16.msra.mxu0 %v1045_v1  ;;  %1038 = vmatpush3.bf16.msra.mxu1 %v1045_v1  ;;  %v78_v21 = vpack.c.bf16 %v45_v17, %v44_v16  ;;  %v46_v24 = vld [vmem:[%s1329_s0 + $0xf0] sm:$0xff]  ;;  %v47_v25 = vld [vmem:[%s1329_s0 + $0xf8] sm:$0xff]  ;;  %v24_v26 = vld [vmem:[%s1329_s0 + $0x40] sm:$0xff] }
   0x8   :  { %981 = vmatprep.subr.bf16.mxu0 %v1046_v2  ;;  %1035 = vmatprep.subr.bf16.mxu1 %v1046_v2  ;;  %v25_v27 = vld [vmem:[%s1329_s0 + $0x48] sm:$0xff]  ;;  %v48_v28 = vld [vmem:[%s1329_s0 + $0x100] sm:$0xff] }
   0x9   :  { %v49_v29 = vld [vmem:[%s1329_s0 + $0x108] sm:$0xff] }
   0xb   :  { %982 = vmatpush3.bf16.msra.mxu0 %v1046_v2  ;;  %1039 = vmatpush3.bf16.msra.mxu1 %v1046_v2 }
   0xc   :  { %983 = vmatprep.subr.bf16.mxu0 %v1047_v9  ;;  %1036 = vmatprep.subr.bf16.mxu1 %v1047_v9 }
   0xf   :  { %984 = vmatpush3.bf16.msra.mxu0 %v1047_v9  ;;  %1040 = vmatpush3.bf16.msra.mxu1 %v1047_v9 }
  0x12   :  { %986 = vmatmul.mubr.msk.bf16.vlgmr.msra.gmra.mxu0 %vm127_vm0, %v65_v18  ;;  %1010 = vmatmul.mubr.msk.bf16.vlgmr.msra.gmra.mxu1 %vm127_vm0, %v77_v19 }
  0x13   :  { %989 = vmatprep.mubr.msk.bf16.mxu0 %vm127_vm0, %v66_v20  ;;  %1013 = vmatprep.mubr.msk.bf16.mxu1 %vm127_vm0, %v78_v21 }
  0x14   :  { %8 = vsyncpa [#allocation3], 0  ;;  %v67_v30 = vpack.c.bf16 %v23_v23, %v22_v22  ;;  %v79_v31 = vpack.c.bf16 %v47_v25, %v46_v24  ;;  %v68_v32 = vpack.c.bf16 %v25_v27, %v24_v26  ;;  %v80_v33 = vpack.c.bf16 %v49_v29, %v48_v28  ;;  %v26_v34 = vld [vmem:[%s1329_s0 + $0x50] sm:$0xff]  ;;  %v27_v35 = vld [vmem:[%s1329_s0 + $0x58] sm:$0xff] }
  0x15   :  { %v50_v36 = vld [vmem:[%s1329_s0 + $0x110] sm:$0xff]  ;;  %v51_v37 = vld [vmem:[%s1329_s0 + $0x118] sm:$0xff]  ;;  %v28_v38 = vld [vmem:[%s1329_s0 + $0x60] sm:$0xff]  ;;  %v69_v42 = vpack.c.bf16 %v27_v35, %v26_v34 }
  0x16   :  { %v29_v39 = vld [vmem:[%s1329_s0 + $0x68] sm:$0xff]  ;;  %v52_v40 = vld [vmem:[%s1329_s0 + $0x120] sm:$0xff]  ;;  %v81_v43 = vpack.c.bf16 %v51_v37, %v50_v36  ;;  %v30_v46 = vld [vmem:[%s1329_s0 + $0x70] sm:$0xff] }
  0x17   :  { %v53_v41 = vld [vmem:[%s1329_s0 + $0x128] sm:$0xff]  ;;  %v70_v44 = vpack.c.bf16 %v29_v39, %v28_v38  ;;  %v31_v47 = vld [vmem:[%s1329_s0 + $0x78] sm:$0xff]  ;;  %v54_v48 = vld [vmem:[%s1329_s0 + $0x130] sm:$0xff] }
  0x18   :  { %v82_v45 = vpack.c.bf16 %v53_v41, %v52_v40  ;;  %v55_v49 = vld [vmem:[%s1329_s0 + $0x138] sm:$0xff]  ;;  %v32_v50 = vld [vmem:[%s1329_s0 + $0x80] sm:$0xff]  ;;  %v33_v51 = vld [vmem:[%s1329_s0 + $0x88] sm:$0xff]  ;;  %v71_v54 = vpack.c.bf16 %v31_v47, %v30_v46 }
  0x19   :  { %v56_v52 = vld [vmem:[%s1329_s0 + $0x140] sm:$0xff]  ;;  %v57_v53 = vld [vmem:[%s1329_s0 + $0x148] sm:$0xff]  ;;  %v83_v55 = vpack.c.bf16 %v55_v49, %v54_v48  ;;  %v72_v56 = vpack.c.bf16 %v33_v51, %v32_v50  ;;  %v34_v58 = vld [vmem:[%s1329_s0 + $0x90] sm:$0xff] }
  0x1a   :  { %990 = vmatmul.mubr.msk.bf16.gmra.mxu0 %vm127_vm0, %v67_v30  ;;  %1014 = vmatmul.mubr.msk.bf16.gmra.mxu1 %vm127_vm0, %v79_v31  ;;  %v84_v57 = vpack.c.bf16 %v57_v53, %v56_v52  ;;  %v35_v59 = vld [vmem:[%s1329_s0 + $0x98] sm:$0xff]  ;;  %v58_v60 = vld [vmem:[%s1329_s0 + $0x150] sm:$0xff]  ;;  %v36_v62 = vld [vmem:[%s1329_s0 + $0xa0] sm:$0xff] }
  0x1b   :  { %993 = vmatprep.mubr.msk.bf16.mxu0 %vm127_vm0, %v68_v32  ;;  %1017 = vmatprep.mubr.msk.bf16.mxu1 %vm127_vm0, %v80_v33  ;;  %v59_v61 = vld [vmem:[%s1329_s0 + $0x158] sm:$0xff]  ;;  %v37_v63 = vld [vmem:[%s1329_s0 + $0xa8] sm:$0xff]  ;;  %v60_v0 = vld [vmem:[%s1329_s0 + $0x160] sm:$0xff]  ;;  %v73_v2 = vpack.c.bf16 %v35_v59, %v34_v58 }
  0x1c   :  { %v61_v1 = vld [vmem:[%s1329_s0 + $0x168] sm:$0xff]  ;;  %v85_v3 = vpack.c.bf16 %v59_v61, %v58_v60  ;;  %v74_v4 = vpack.c.bf16 %v37_v63, %v36_v62  ;;  %v38_v6 = vld [vmem:[%s1329_s0 + $0xb0] sm:$0xff]  ;;  %v39_v7 = vld [vmem:[%s1329_s0 + $0xb8] sm:$0xff] }
  0x1d   :  { %v86_v5 = vpack.c.bf16 %v61_v1, %v60_v0  ;;  %v62_v8 = vld [vmem:[%s1329_s0 + $0x170] sm:$0xff]  ;;  %v63_v9 = vld [vmem:[%s1329_s0 + $0x178] sm:$0xff]  ;;  %v75_v10 = vpack.c.bf16 %v39_v7, %v38_v6  ;;  %v1276_v14 = vld [vmem:[%s1331_s2] ss:$0 sm:$0xff]  ;;  %s1070_s0 = smov [#allocation2]  }
  0x1e   :  { %v87_v11 = vpack.c.bf16 %v63_v9, %v62_v8  ;;  %s670_s2 = sshll.u32 %s1070_s0, 4  ;;  %s671_s2 = int_to_ptr.vmem [resolvable:$true] %s670_s2 }
  0x1f   :  { %s1048_s7 = scalar_lea.vmem %s671_s2, 3072  ;;  %p1053_p1 = scmp.lt.s32.totalorder %s671_s2, %s671_s2 }
  0x20   :  { %p1049_p0 = scmp.ne.s32.totalorder %s671_s2, %s1048_s7  ;;  %p1054_p2 = scmp.lt.s32.totalorder %s1048_s7, %s1048_s7 }
  0x22   :  { %994 = vmatmul.mubr.msk.bf16.gmra.mxu0 %vm127_vm0, %v69_v42  ;;  %1018 = vmatmul.mubr.msk.bf16.gmra.mxu1 %vm127_vm0, %v81_v43  ;;  %p1055_p3 = por %p1054_p2, %p1053_p1 }
  0x23   :  { %997 = vmatprep.mubr.msk.bf16.mxu0 %vm127_vm0, %v70_v44  ;;  %1021 = vmatprep.mubr.msk.bf16.mxu1 %vm127_vm0, %v82_v45 }
  0x24   :  { %p1056_p4 = pnand %p1055_p3, %p1049_p0 }
  0x2a   :  { %998 = vmatmul.mubr.msk.bf16.gmra.mxu0 %vm127_vm0, %v71_v54  ;;  %1022 = vmatmul.mubr.msk.bf16.gmra.mxu1 %vm127_vm0, %v83_v55 }
  0x2b   :  { %1001 = vmatprep.mubr.msk.bf16.mxu0 %vm127_vm0, %v72_v56  ;;  %1025 = vmatprep.mubr.msk.bf16.mxu1 %vm127_vm0, %v84_v57 }
  0x32   :  { %1002 = vmatmul.mubr.msk.bf16.gmra.mxu0 %vm127_vm0, %v73_v2  ;;  %1026 = vmatmul.mubr.msk.bf16.gmra.mxu1 %vm127_vm0, %v85_v3 }
  0x33   :  { %1005 = vmatprep.mubr.msk.bf16.mxu0 %vm127_vm0, %v74_v4  ;;  %1029 = vmatprep.mubr.msk.bf16.mxu1 %vm127_vm0, %v86_v5 }
  0x3a   :  { %1006 = vmatmul.mubr.msk.bf16.gmra.mxu0 %vm127_vm0, %v75_v10  ;;  %1030 = vmatmul.mubr.msk.bf16.gmra.mxu1 %vm127_vm0, %v87_v11 }
  0xd2   :  { %v987_v12 = vpop.f32.mrf.mxu0  ;;  %v1011_v13 = vpop.f32.mrf.mxu1 }
  0xd3   :  { %v243_v19 = vadd.f32 %v987_v12, %v1276_v14  ;;  %v339_v20 = vadd.f32 %v1011_v13, %v1276_v14 }
  0xd4   :  { %v234_v15 = vpop.f32.mrf.mxu0  ;;  %v330_v16 = vpop.f32.mrf.mxu1 }
  0xd5   :  { %v235_v23 = vadd.f32 %v1276_v14, %v234_v15  ;;  %v331_v24 = vadd.f32 %v1276_v14, %v330_v16 }
  0xd6   :  { %v988_v17 = vpop.f32.mrf.mxu0  ;;  %v1012_v18 = vpop.f32.mrf.mxu1 }
  0xd7   :  { %v246_v21 = vadd.f32 %v988_v17, %v1276_v14  ;;  %v342_v22 = vadd.f32 %v1012_v18, %v1276_v14 }
  0xd8   :  { %v237_v25 = vpop.f32.mrf.mxu0  ;;  %v333_v26 = vpop.f32.mrf.mxu1 }
  0xd9   :  { %v814_v27 = vpack.c.bf16 %v246_v21, %v243_v19  ;;  %v874_v28 = vpack.c.bf16 %v342_v22, %v339_v20  ;;  %v238_v29 = vadd.f32 %v1276_v14, %v237_v25  ;;  %v334_v30 = vadd.f32 %v1276_v14, %v333_v26 }
  0xda   :  { %v991_v31 = vpop.f32.mrf.mxu0  ;;  %v1015_v32 = vpop.f32.mrf.mxu1 }
  0xdb   :  { %926 = vst [vmem:[#allocation2 + $0x8] sm:$0xff] %v814_v27   ;;  %938 = vst [vmem:[#allocation2 + $0x68] sm:$0xff] %v874_v28   ;;  %v809_v33 = vpack.c.bf16 %v238_v29, %v235_v23  ;;  %v869_v34 = vpack.c.bf16 %v334_v30, %v331_v24  ;;  %v259_v39 = vadd.f32 %v991_v31, %v1276_v14 }
  0xdc   :  { %v250_v35 = vpop.f32.mrf.mxu0  ;;  %v346_v36 = vpop.f32.mrf.mxu1  ;;  %v355_v40 = vadd.f32 %v1015_v32, %v1276_v14 }
  0xdd   :  { %810 = vst [vmem:[#allocation2] sm:$0xff] %v809_v33   ;;  %937 = vst [vmem:[#allocation2 + $0x60] sm:$0xff] %v869_v34   ;;  %v251_v43 = vadd.f32 %v1276_v14, %v250_v35  ;;  %v347_v44 = vadd.f32 %v1276_v14, %v346_v36 }
  0xde   :  { %v992_v37 = vpop.f32.mrf.mxu0  ;;  %v1016_v38 = vpop.f32.mrf.mxu1 }
  0xdf   :  { %v262_v41 = vadd.f32 %v992_v37, %v1276_v14  ;;  %v358_v42 = vadd.f32 %v1016_v38, %v1276_v14 }
  0xe0   :  { %v253_v45 = vpop.f32.mrf.mxu0  ;;  %v349_v46 = vpop.f32.mrf.mxu1 }
  0xe1   :  { %v824_v47 = vpack.c.bf16 %v262_v41, %v259_v39  ;;  %v884_v48 = vpack.c.bf16 %v358_v42, %v355_v40  ;;  %v254_v49 = vadd.f32 %v1276_v14, %v253_v45  ;;  %v350_v50 = vadd.f32 %v1276_v14, %v349_v46 }
  0xe2   :  { %v995_v51 = vpop.f32.mrf.mxu0  ;;  %v1019_v52 = vpop.f32.mrf.mxu1 }
  0xe3   :  { %928 = vst [vmem:[#allocation2 + $0x18] sm:$0xff] %v824_v47   ;;  %940 = vst [vmem:[#allocation2 + $0x78] sm:$0xff] %v884_v48   ;;  %v819_v53 = vpack.c.bf16 %v254_v49, %v251_v43  ;;  %v879_v54 = vpack.c.bf16 %v350_v50, %v347_v44  ;;  %v275_v59 = vadd.f32 %v995_v51, %v1276_v14 }
  0xe4   :  { %v266_v55 = vpop.f32.mrf.mxu0  ;;  %v362_v56 = vpop.f32.mrf.mxu1  ;;  %v371_v60 = vadd.f32 %v1019_v52, %v1276_v14 }
  0xe5   :  { %927 = vst [vmem:[#allocation2 + $0x10] sm:$0xff] %v819_v53   ;;  %939 = vst [vmem:[#allocation2 + $0x70] sm:$0xff] %v879_v54   ;;  %v267_v63 = vadd.f32 %v1276_v14, %v266_v55  ;;  %v363_v0 = vadd.f32 %v1276_v14, %v362_v56 }
  0xe6   :  { %v996_v57 = vpop.f32.mrf.mxu0  ;;  %v1020_v58 = vpop.f32.mrf.mxu1 }
  0xe7   :  { %v278_v61 = vadd.f32 %v996_v57, %v1276_v14  ;;  %v374_v62 = vadd.f32 %v1020_v58, %v1276_v14 }
  0xe8   :  { %v269_v1 = vpop.f32.mrf.mxu0  ;;  %v365_v2 = vpop.f32.mrf.mxu1 }
  0xe9   :  { %v834_v3 = vpack.c.bf16 %v278_v61, %v275_v59  ;;  %v894_v4 = vpack.c.bf16 %v374_v62, %v371_v60  ;;  %v270_v5 = vadd.f32 %v1276_v14, %v269_v1  ;;  %v366_v6 = vadd.f32 %v1276_v14, %v365_v2 }
  0xea   :  { %v999_v7 = vpop.f32.mrf.mxu0  ;;  %v1023_v8 = vpop.f32.mrf.mxu1 }
  0xeb   :  { %930 = vst [vmem:[#allocation2 + $0x28] sm:$0xff] %v834_v3   ;;  %942 = vst [vmem:[#allocation2 + $0x88] sm:$0xff] %v894_v4   ;;  %v829_v9 = vpack.c.bf16 %v270_v5, %v267_v63  ;;  %v889_v10 = vpack.c.bf16 %v366_v6, %v363_v0  ;;  %v291_v16 = vadd.f32 %v999_v7, %v1276_v14 }
  0xec   :  { %v282_v11 = vpop.f32.mrf.mxu0  ;;  %v378_v12 = vpop.f32.mrf.mxu1  ;;  %v387_v17 = vadd.f32 %v1023_v8, %v1276_v14 }
  0xed   :  { %929 = vst [vmem:[#allocation2 + $0x20] sm:$0xff] %v829_v9   ;;  %941 = vst [vmem:[#allocation2 + $0x80] sm:$0xff] %v889_v10   ;;  %v283_v20 = vadd.f32 %v1276_v14, %v282_v11  ;;  %v379_v21 = vadd.f32 %v1276_v14, %v378_v12 }
  0xee   :  { %v1000_v13 = vpop.f32.mrf.mxu0  ;;  %v1024_v15 = vpop.f32.mrf.mxu1 }
  0xef   :  { %v294_v18 = vadd.f32 %v1000_v13, %v1276_v14  ;;  %v390_v19 = vadd.f32 %v1024_v15, %v1276_v14 }
  0xf0   :  { %v285_v22 = vpop.f32.mrf.mxu0  ;;  %v381_v23 = vpop.f32.mrf.mxu1 }
  0xf1   :  { %v844_v24 = vpack.c.bf16 %v294_v18, %v291_v16  ;;  %v904_v25 = vpack.c.bf16 %v390_v19, %v387_v17  ;;  %v286_v26 = vadd.f32 %v1276_v14, %v285_v22  ;;  %v382_v27 = vadd.f32 %v1276_v14, %v381_v23 }
  0xf2   :  { %v1003_v28 = vpop.f32.mrf.mxu0  ;;  %v1027_v29 = vpop.f32.mrf.mxu1 }
  0xf3   :  { %932 = vst [vmem:[#allocation2 + $0x38] sm:$0xff] %v844_v24   ;;  %944 = vst [vmem:[#allocation2 + $0x98] sm:$0xff] %v904_v25   ;;  %v839_v30 = vpack.c.bf16 %v286_v26, %v283_v20  ;;  %v899_v31 = vpack.c.bf16 %v382_v27, %v379_v21  ;;  %v307_v36 = vadd.f32 %v1003_v28, %v1276_v14 }
  0xf4   :  { %v298_v32 = vpop.f32.mrf.mxu0  ;;  %v394_v33 = vpop.f32.mrf.mxu1  ;;  %v403_v37 = vadd.f32 %v1027_v29, %v1276_v14 }
  0xf5   :  { %931 = vst [vmem:[#allocation2 + $0x30] sm:$0xff] %v839_v30   ;;  %943 = vst [vmem:[#allocation2 + $0x90] sm:$0xff] %v899_v31   ;;  %v299_v40 = vadd.f32 %v1276_v14, %v298_v32  ;;  %v395_v41 = vadd.f32 %v1276_v14, %v394_v33 }
  0xf6   :  { %v1004_v34 = vpop.f32.mrf.mxu0  ;;  %v1028_v35 = vpop.f32.mrf.mxu1 }
  0xf7   :  { %v310_v38 = vadd.f32 %v1004_v34, %v1276_v14  ;;  %v406_v39 = vadd.f32 %v1028_v35, %v1276_v14 }
  0xf8   :  { %v301_v42 = vpop.f32.mrf.mxu0  ;;  %v397_v43 = vpop.f32.mrf.mxu1 }
  0xf9   :  { %v854_v44 = vpack.c.bf16 %v310_v38, %v307_v36  ;;  %v914_v45 = vpack.c.bf16 %v406_v39, %v403_v37  ;;  %v302_v46 = vadd.f32 %v1276_v14, %v301_v42  ;;  %v398_v47 = vadd.f32 %v1276_v14, %v397_v43 }
  0xfa   :  { %v1007_v48 = vpop.f32.mrf.mxu0  ;;  %v1031_v49 = vpop.f32.mrf.mxu1 }
  0xfb   :  { %934 = vst [vmem:[#allocation2 + $0x48] sm:$0xff] %v854_v44   ;;  %946 = vst [vmem:[#allocation2 + $0xa8] sm:$0xff] %v914_v45   ;;  %v849_v50 = vpack.c.bf16 %v302_v46, %v299_v40  ;;  %v909_v51 = vpack.c.bf16 %v398_v47, %v395_v41  ;;  %v323_v56 = vadd.f32 %v1007_v48, %v1276_v14 }
  0xfc   :  { %v314_v52 = vpop.f32.mrf.mxu0  ;;  %v410_v53 = vpop.f32.mrf.mxu1  ;;  %v419_v57 = vadd.f32 %v1031_v49, %v1276_v14 }
  0xfd   :  { %933 = vst [vmem:[#allocation2 + $0x40] sm:$0xff] %v849_v50   ;;  %945 = vst [vmem:[#allocation2 + $0xa0] sm:$0xff] %v909_v51   ;;  %v315_v60 = vadd.f32 %v1276_v14, %v314_v52  ;;  %v411_v61 = vadd.f32 %v1276_v14, %v410_v53 }
  0xfe   :  { %v1008_v54 = vpop.f32.mrf.mxu0  ;;  %v1032_v55 = vpop.f32.mrf.mxu1 }
  0xff   :  { %v326_v58 = vadd.f32 %v1008_v54, %v1276_v14  ;;  %v422_v59 = vadd.f32 %v1032_v55, %v1276_v14 }
 0x100   :  { %v317_v62 = vpop.f32.mrf.mxu0  ;;  %v413_v63 = vpop.f32.mrf.mxu1 }
 0x101   :  { %v864_v0 = vpack.c.bf16 %v326_v58, %v323_v56  ;;  %v924_v1 = vpack.c.bf16 %v422_v59, %v419_v57  ;;  %v318_v2 = vadd.f32 %v1276_v14, %v317_v62  ;;  %v414_v3 = vadd.f32 %v1276_v14, %v413_v63 }
 0x103   :  { %936 = vst [vmem:[#allocation2 + $0x58] sm:$0xff] %v864_v0   ;;  %948 = vst [vmem:[#allocation2 + $0xb8] sm:$0xff] %v924_v1   ;;  %v859_v4 = vpack.c.bf16 %v318_v2, %v315_v60  ;;  %v919_v5 = vpack.c.bf16 %v414_v3, %v411_v61 }
 0x105   :  { %935 = vst [vmem:[#allocation2 + $0x50] sm:$0xff] %v859_v4   ;;  %947 = vst [vmem:[#allocation2 + $0xb0] sm:$0xff] %v919_v5  }
 0x106   :  { %1059 = shalt.err (!%p1056_p4)
}
 0x107   :  { %s1071_s1 = smov 64   ;;  %s1072_s8 = smov 4  }
 0x108   :  { %676 = dma.vmem_to_hbm [thread:$0]  %s671_s2, 3072, %s1332_s3, [#allocation3], %s1071_s1, %s1071_s1, %s1072_s8  }
 0x109   :  { %1068 = dma.done.wait [#allocation3], 3072  }
 0x10a   :  { %1069 = vsyncadd [#allocation3], 4294964224 }
 0x10b   :  { %680 = vsyncpa [#allocation3], 1 }

</bundles_post_ra>
